<compile_context>
chip_gen: v5e
topology: v5e:2x2
jax: 0.10.0
libtpu: 0.0.40
codegen_flags: <defaults>
</compile_context>

<pallas_src>
import functools

import numpy as np

import jax
import jax.numpy as jnp
from jax.experimental import pallas as pl
from jax.experimental.pallas import tpu as pltpu


def _dwa_kernel(lm_ref, prev_ref, w_ref, prev_out_ref, *, num_tasks, temp, alpha):
    """Single-vreg DWA update.

    lm_ref:        (2, LANES) f32  row 0 = losses, row 1 = validity mask
    prev_ref:      (1, LANES) f32  device-resident previous losses
    w_ref:         (1, LANES) f32  output weights (valid lanes only meaningful)
    prev_out_ref:  (1, LANES) f32  updated previous losses (aliased with prev_ref)
    """
    loss = lm_ref[0:1, :]
    mask = lm_ref[1:2, :]
    prev = prev_ref[...]

    current = (1.0 - alpha) * prev + alpha * loss
    # ratio = current / (prev + 1e-8)  -> EUP approx reciprocal + VPU multiply
    ratio = current * pl.reciprocal(prev + 1e-8, approx=True)
    z = jnp.clip(ratio * (1.0 / temp), -50.0, 50.0)
    e = jnp.exp(z) * mask                              # invalid/padded lanes -> 0

    denom = jnp.sum(e, axis=-1, keepdims=True)         # (1, 1)
    inv_denom = pl.reciprocal(denom, approx=True)      # EUP slot
    w_ref[...] = (jnp.float32(num_tasks) * e) * inv_denom

    # Only valid tasks get their history advanced; others keep prev unchanged.
    prev_out_ref[...] = jnp.where(mask > 0.0, current, prev)


class DWALossPallas:
    """JAX/Pallas re-implementation of CGCNN_MT DWALoss forward semantics."""

    def __init__(self, num_tasks, temp=2.0, alpha=0.9, init_weights=None):
        self.num_tasks = num_tasks
        self.temp = float(temp)
        self.alpha = float(alpha)
        self.loss_history = {}
        if init_weights is not None:
            self.weights = list(init_weights)
        else:
            self.weights = [1.0 for _ in range(num_tasks)]

        # Pad the task axis to full 128-lane vregs (lane-dense I/O).
        self._lanes = ((num_tasks + 127) // 128) * 128

        # Device-resident previous-loss state (one row, lane-padded).
        self._prev = jnp.zeros((1, self._lanes), dtype=jnp.float32)

        kernel = functools.partial(
            _dwa_kernel, num_tasks=num_tasks, temp=self.temp, alpha=self.alpha)
        vmem = pltpu.MemorySpace.VMEM
        lanes = self._lanes
        call = pl.pallas_call(
            kernel,
            out_shape=(
                jax.ShapeDtypeStruct((1, lanes), jnp.float32),   # weights
                jax.ShapeDtypeStruct((1, lanes), jnp.float32),   # new prev
            ),
            in_specs=[
                pl.BlockSpec((2, lanes), lambda: (0, 0), memory_space=vmem),
                pl.BlockSpec((1, lanes), lambda: (0, 0), memory_space=vmem),
            ],
            out_specs=[
                pl.BlockSpec((1, lanes), lambda: (0, 0), memory_space=vmem),
                pl.BlockSpec((1, lanes), lambda: (0, 0), memory_space=vmem),
            ],
            # Output 1 (new prev) aliases input 1 (prev): in-place history update.
            input_output_aliases={1: 1},
        )
        # Donate the prev-state buffer so the alias is honored at the jit boundary.
        self._update = jax.jit(call, donate_argnums=(1,))

    def forward(self, losses, valid_task_indices=None, split='train'):
        if valid_task_indices is None:
            valid_task_indices = list(range(self.num_tasks))
        assert len(losses) == len(valid_task_indices), \
            'Number of losses and valid task indices must match.'
        losses = [float(l) for l in losses]

        if split != 'train':
            return self.weights

        # Guard the n == 0 edge case (would produce denom = 0 in the kernel).
        if len(valid_task_indices) == 0:
            return self.weights

        if any(task_id not in self.loss_history for task_id in valid_task_indices):
            new_ids, new_vals = [], []
            for task_id, loss in zip(valid_task_indices, losses):
                if task_id not in self.loss_history:
                    self.loss_history[task_id] = [loss, loss]
                    new_ids.append(task_id)
                    new_vals.append(loss)
            # Seed the device-resident prev state for the newly seen tasks.
            self._prev = self._prev.at[
                0, jnp.asarray(new_ids, dtype=jnp.int32)
            ].set(jnp.asarray(new_vals, dtype=jnp.float32))
            return self.weights

        # --- update path: one H2D (losses+mask), in-place prev update on device,
        #     one D2H (weights row). ---
        lm = np.zeros((2, self._lanes), dtype=np.float32)
        for task_id, loss in zip(valid_task_indices, losses):
            lm[0, task_id] = loss
            lm[1, task_id] = 1.0

        w_dev, self._prev = self._update(jnp.asarray(lm), self._prev)

        # Single D2H transfer per step (weights only); prev never leaves device.
        w_np = np.asarray(jax.device_get(w_dev))[0]
        self.weights = [float(w_np[t]) for t in valid_task_indices]

        # TODO(synk): host-side loss_history values are not refreshed after update
        # steps (that would reintroduce a per-step D2H sync); the authoritative
        # previous-loss state lives on device in self._prev.
        return self.weights

    __call__ = forward


class _DWANumpyRef:
    """Pure-numpy mirror of the PyTorch reference, for validation."""

    def __init__(self, num_tasks, temp=2.0, alpha=0.9):
        self.num_tasks = num_tasks
        self.temp = temp
        self.alpha = alpha
        self.loss_history = {}
        self.weights = [1.0 for _ in range(num_tasks)]

    def step(self, losses, valid=None):
        if valid is None:
            valid = list(range(self.num_tasks))
        losses = np.asarray(losses, dtype=np.float64)
        if any(t not in self.loss_history for t in valid):
            for t, l in zip(valid, losses):
                if t not in self.loss_history:
                    self.loss_history[t] = [float(l), float(l)]
            return list(self.weights)
        ratios = []
        for t, l in zip(valid, losses):
            prev = self.loss_history[t][-1]
            cur = (1 - self.alpha) * prev + self.alpha * float(l)
            ratios.append(cur / (prev + 1e-8))
            self.loss_history[t].append(cur)
            if len(self.loss_history[t]) > 2:
                self.loss_history[t].pop(0)
        ratios = np.asarray(ratios)
        e = np.exp(np.clip(ratios / self.temp, -50, 50))
        self.weights = list(self.num_tasks * e / e.sum())
        return list(self.weights)


if __name__ == "__main__":
    num_tasks = 8
    key = jax.random.PRNGKey(0)
    keys = jax.random.split(key, 4)
    # Deterministic synthetic per-task losses (positive values), 4 steps.
    steps = [np.asarray(jnp.abs(jax.random.normal(k, (num_tasks,))) + 0.5,
                        dtype=np.float64) for k in keys]

    dwa = DWALossPallas(num_tasks=num_tasks, temp=2.0, alpha=0.9)
    ref = _DWANumpyRef(num_tasks=num_tasks, temp=2.0, alpha=0.9)

    # Step 1: initializes history, returns default weights (no kernel launch).
    w = dwa(list(steps[0]))
    rw = ref.step(list(steps[0]))
    assert w == [1.0] * num_tasks and rw == [1.0] * num_tasks

    # Step 2: full update via the Pallas kernel (prev aliased in place on device).
    w = dwa(list(steps[1]))
    rw = ref.step(list(steps[1]))
    w_np, rw_np = np.asarray(w), np.asarray(rw)
    assert np.all(np.isfinite(w_np))
    np.testing.assert_allclose(w_np, rw_np, rtol=1e-2, atol=1e-4)
    assert abs(float(w_np.sum()) - num_tasks) < 0.05, float(w_np.sum())

    # Step 3: subset of valid tasks — exercises the validity-mask path and the
    # selective in-place history update.
    valid = [0, 2, 5]
    sub_losses = [float(steps[2][t]) for t in valid]
    w = dwa(sub_losses, valid_task_indices=valid)
    rw = ref.step(sub_losses, valid=valid)
    np.testing.assert_allclose(np.asarray(w), np.asarray(rw), rtol=1e-2, atol=1e-4)

    # Step 4: full update again — checks the device-resident history carried
    # correctly through the aliased writes of steps 2 and 3.
    w = dwa(list(steps[3]))
    rw = ref.step(list(steps[3]))
    np.testing.assert_allclose(np.asarray(w), np.asarray(rw), rtol=1e-2, atol=1e-4)

    jax.block_until_ready(dwa._prev)
    print("KERNEL_OK")
</pallas_src>

<mosaic_0001>
module attributes {stable_mosaic.version = 11 : i64} {
  func.func @_dwa_kernel(%arg0: memref<2x128xf32, #tpu.memory_space<vmem>>, %arg1: memref<1x128xf32, #tpu.memory_space<vmem>>, %arg2: memref<1x128xf32, #tpu.memory_space<vmem>>, %arg3: memref<1x128xf32, #tpu.memory_space<vmem>>) attributes {dimension_semantics = [], scalar_prefetch = 0 : i64, scratch_operands = 0 : i64, tpu.core_type = #tpu.core_type<tc>} {
    %c0 = arith.constant 0 : index
    %c0_0 = arith.constant 0 : index
    %0 = vector.load %arg0[%c0, %c0_0] : memref<2x128xf32, #tpu.memory_space<vmem>>, vector<1x128xf32>
    %c1 = arith.constant 1 : index
    %c0_1 = arith.constant 0 : index
    %1 = vector.load %arg0[%c1, %c0_1] : memref<2x128xf32, #tpu.memory_space<vmem>>, vector<1x128xf32>
    %c0_2 = arith.constant 0 : index
    %c0_3 = arith.constant 0 : index
    %2 = vector.load %arg1[%c0_2, %c0_3] : memref<1x128xf32, #tpu.memory_space<vmem>>, vector<1x128xf32>
    %cst = arith.constant 1.000000e-01 : f32
    %3 = vector.broadcast %cst : f32 to vector<1x128xf32>
    %4 = arith.mulf %3, %2 : vector<1x128xf32>
    %cst_4 = arith.constant 0.899999976 : f32
    %5 = vector.broadcast %cst_4 : f32 to vector<1x128xf32>
    %6 = arith.mulf %5, %0 : vector<1x128xf32>
    %7 = arith.addf %4, %6 : vector<1x128xf32>
    %cst_5 = arith.constant 9.99999993E-9 : f32
    %8 = vector.broadcast %cst_5 : f32 to vector<1x128xf32>
    %9 = arith.addf %2, %8 : vector<1x128xf32>
    %10 = tpu.reciprocal %9 {approx = true} : vector<1x128xf32> -> vector<1x128xf32>
    %11 = arith.mulf %7, %10 : vector<1x128xf32>
    %cst_6 = arith.constant 5.000000e-01 : f32
    %12 = vector.broadcast %cst_6 : f32 to vector<1x128xf32>
    %13 = arith.mulf %11, %12 : vector<1x128xf32>
    %cst_7 = arith.constant -5.000000e+01 : f32
    %cst_8 = arith.constant 5.000000e+01 : f32
    %14 = vector.broadcast %cst_7 : f32 to vector<1x128xf32>
    %15 = arith.maximumf %14, %13 : vector<1x128xf32>
    %16 = vector.broadcast %cst_8 : f32 to vector<1x128xf32>
    %17 = arith.minimumf %16, %15 : vector<1x128xf32>
    %18 = math.exp %17 : vector<1x128xf32>
    %19 = arith.mulf %18, %1 : vector<1x128xf32>
    %cst_9 = arith.constant dense<0.000000e+00> : vector<1xf32>
    %20 = vector.multi_reduction <add>, %19, %cst_9 [1] : vector<1x128xf32> to vector<1xf32>
    %21 = vector.shape_cast %20 : vector<1xf32> to vector<1x1xf32>
    %22 = tpu.reciprocal %21 {approx = true} : vector<1x1xf32> -> vector<1x1xf32>
    %cst_10 = arith.constant 8.000000e+00 : f32
    %23 = vector.broadcast %cst_10 : f32 to vector<1x128xf32>
    %24 = arith.mulf %23, %19 : vector<1x128xf32>
    %25 = vector.broadcast %22 : vector<1x1xf32> to vector<1x128xf32>
    %26 = arith.mulf %24, %25 : vector<1x128xf32>
    %c0_11 = arith.constant 0 : index
    %c0_12 = arith.constant 0 : index
    %27 = vector.load %arg2[%c0_11, %c0_12] : memref<1x128xf32, #tpu.memory_space<vmem>>, vector<1x128xf32>
    tpu.vector_store %arg2[%c0_11, %c0_12], %26 {strides = array<i32>} : memref<1x128xf32, #tpu.memory_space<vmem>>, vector<1x128xf32>,
    %cst_13 = arith.constant 0.000000e+00 : f32
    %28 = vector.broadcast %cst_13 : f32 to vector<1x128xf32>
    %29 = arith.cmpf ogt, %1, %28 : vector<1x128xf32>
    %30 = arith.select %29, %7, %2 : vector<1x128xi1>, vector<1x128xf32>
    %c0_14 = arith.constant 0 : index
    %c0_15 = arith.constant 0 : index
    %31 = vector.load %arg3[%c0_14, %c0_15] : memref<1x128xf32, #tpu.memory_space<vmem>>, vector<1x128xf32>
    tpu.vector_store %arg3[%c0_14, %c0_15], %30 {strides = array<i32>} : memref<1x128xf32, #tpu.memory_space<vmem>>, vector<1x128xf32>,
    return
  }
}

</mosaic_0001>

<bundles_post_ra>
// kernel: tpu_custom_call.1
= control target key start
LH: loop header
LB: loop body
LE: loop exit
PB: predicated region body
PF: predicated region fallthrough
CT: control target
= control target key end

     0   :  { %9 = vsyncpa [#allocation3], 0  ;;  %s170_s0 = inlined_call_operand.hbm [shape: f32[2,128], index: 0, kind: input, shape index: {}]   ;;  %s171_s1 = inlined_call_operand.vmem [shape: f32[1,128], index: 1, kind: input, shape index: {}, may-alias: {1,3}]   ;;  %s172_s2 = inlined_call_operand.hbm [shape: f32[1,128], index: 2, kind: output, shape index: {0}]   ;;  %s173_s3 = inlined_call_operand.vmem [shape: f32[1,128], index: 3, kind: output, shape index: {1}, may-alias: {1,3}]  }
   0x1   :  { %10 = vsyncpa [#allocation4], 0  ;;  %s16_s14 = sshll.u32 %s170_s0, 4  ;;  %s136_s15 = smov [#allocation2]   ;;  %s17_s14 = int_to_ptr.hbm [resolvable:$true] %s16_s14 }
   0x2   :  { %s18_s16 = sshll.u32 %s136_s15, 4  ;;  %s19_s16 = int_to_ptr.vmem [resolvable:$true] %s18_s16 }
   0x3   :  { %21 = dma.hbm_to_vmem [thread:$0]  %s17_s14, 32, %s19_s16, [#allocation3]  }
   0x4   :  { %132 = dma.done.wait [#allocation3], 32  }
   0x5   :  { %133 = vsyncadd [#allocation3], 4294967264  ;;  %v28_v0 = vld [vmem:[#allocation2] sm:$0x1]  ;;  %v29_v1 = vld [vmem:[#allocation2 + $0x1] sm:$0x1] }
   0x6   :  { %v30_v2 = vld [vmem:[%s171_s1] sm:$0x1]  ;;  %v32_v4 = vmul.f32 0.9, %v28_v0  ;;  %vm51_vm0 = vcmp.gt.f32.partialorder %v29_v1, 0.0  ;;  %vm43_vm1 = vcmask 1040384  }
   0x7   :  { %v31_v3 = vmul.f32 0.1, %v30_v2  ;;  %v34_v5 = vadd.f32 1e-08, %v30_v2  ;;  %s137_s1 = smov [#allocation5]  }
   0x8   :  { %s59_s20 = sshll.u32 %s137_s1, 4  ;;  %s60_s20 = int_to_ptr.vmem [resolvable:$true] %s59_s20 }
   0x9   :  { %v33_v6 = vadd.f32 %v32_v4, %v31_v3  ;;  %78 = vrcp.f32 %v34_v5 }
   0xb   :  { %v52_v7 = vsel %vm51_vm0, %v33_v6, %v30_v2 }
   0xc   :  { %53 = vst [vmem:[%s173_s3] sm:$0x1] %v52_v7  ;;  %s61_s3 = sshll.u32 %s172_s2, 4  ;;  %s62_s3 = int_to_ptr.hbm [resolvable:$true] %s61_s3 }
   0xf   :  { %v79_v8 = vpop.eup %78 }
  0x10   :  { %v36_v9 = vmul.f32 %v79_v8, %v33_v6 }
  0x12   :  { %v37_v10 = vmul.f32 0.5, %v36_v9 }
  0x14   :  { %v75_v11 = vclamps-f32 %v37_v10, 50.0 }
  0x16   :  { %v40_v12 = vmul.f32 1.442695, %v75_v11 }
  0x18   :  { %80 = vpow2.f32 %v40_v12 }
  0x1e   :  { %v81_v13 = vpop.eup %80 }
  0x1f   :  { %v42_v14 = vmul.f32 %v81_v13, %v29_v1 }
  0x21   :  { %v44_v15 = vsel %vm43_vm1, %v42_v14, 0.0  ;;  %v48_v17 = vmul.f32 8.0, %v42_v14 }
  0x22   :  { %45 = vadd.xlane.f32.xlu0 %v44_v15 }
  0x95   :  { %v46_v16 = vpop.xlane.xlu0 %45 }
  0x96   :  { %82 = vrcp.f32 %v46_v16 }
  0x9c   :  { %v83_v18 = vpop.eup %82 }
  0x9d   :  { %v49_v19 = vmul.f32 %v83_v18, %v48_v17 }
  0x9f   :  { %50 = vst [vmem:[#allocation5] sm:$0x1] %v49_v19 }
  0xa0   :  { %64 = dma.vmem_to_hbm [thread:$0]  %s60_s20, 16, %s62_s3, [#allocation4]  }
  0xa1   :  { %134 = dma.done.wait [#allocation4], 16  }
  0xa2   :  { %135 = vsyncadd [#allocation4], 4294967280 }
  0xa3   :  { %73 = vsyncpa [#allocation3], 1 }
  0xa4   :  { %74 = vsyncpa [#allocation4], 1 }

</bundles_post_ra>
